<compile_context>
chip_gen: v5e
topology: v5e:2x2
jax: 0.10.0
libtpu: 0.0.40
codegen_flags: <defaults>
</compile_context>

<pallas_src>
import jax
import jax.numpy as jnp
import numpy as np
from jax.experimental import pallas as pl
from jax.experimental.pallas import tpu as pltpu  # TPU backend (memory spaces etc.)

# ----------------------- synthetic hyper-parameters -------------------------
DICT_SIZE         = 16    # medical-code vocabulary (output size)
TOTAL_NODE_SIZE   = 30    # ontology nodes (leaves + ancestors)
EMBD_SIZE         = 8
HIDDEN_SIZE       = 16
ATTEN_SIZE        = 8
VALUE_SIZE        = 8
PROFILE_SIZE      = 6
PROFILE_EMBD_SIZE = 8
SLOT_NUM          = 4
SEQ_LEN           = 6
BATCH             = 4
# TODO(synk): nn.Dropout is treated as identity (eval-mode semantics); a
# training-mode random dropout mask is not implemented.


# =============================================================================
# Kernel 1: GRAM-style ontology attention, ALL leaf-groups fused in one call.
#   le/ae are level-major flattened: rows [l*S : (l+1)*S] hold level l for all
#   S samples (padded levels carry zeros and mask 0).  One batched matmul over
#   all (L*S) rows, then a masked softmax over levels computed with per-level
#   row slices (no reshapes / lane concatenations inside the kernel).
# =============================================================================
def _make_tree_attn_kernel(n_levels, n_samples):
    L, S = n_levels, n_samples

    def kernel(le_ref, ae_ref, m_ref, wa_l_ref, wa_a_ref, ba_ref, ua_ref, out_ref):
        def mm(a, b):
            return jnp.dot(a, b, preferred_element_type=jnp.float32)

        le = le_ref[...]                               # (L*S, E)
        ae = ae_ref[...]                               # (L*S, E)
        msk = m_ref[...]                               # (L*S, 1)

        h = jnp.tanh(mm(le, wa_l_ref[...]) + mm(ae, wa_a_ref[...]) + ba_ref[...])
        scores = mm(h, ua_ref[...])                    # (L*S, 1)

        # masked softmax over the level axis, per sample
        mx = scores[0:S, :]
        for l in range(1, L):
            mx = jnp.maximum(mx, scores[l * S:(l + 1) * S, :])
        den = jnp.zeros((S, 1), jnp.float32)
        num = jnp.zeros((S, ae.shape[1]), jnp.float32)
        for l in range(L):
            e_l = jnp.exp(scores[l * S:(l + 1) * S, :] - mx) * msk[l * S:(l + 1) * S, :]
            den = den + e_l
            num = num + e_l * ae[l * S:(l + 1) * S, :]
        out_ref[...] = num / den                       # exact division (runs once)

    return kernel


# =============================================================================
# Kernel 2: the full sequential model in ONE invocation (no grid).
#   loop 1: GRU recurrence (fused gates, 1 matmul / step)
#   batched: slot-attention weights for all timesteps
#   loop 2: key-value memory read + erase/add update (pure VPU)
#   batched: profile attention, output projection, softmax, single store.
# =============================================================================
def _make_sequence_kernel(T, B, E, H, V, PE, n_slot):
    def kernel(x_ref, mask_ref, embed_ref, w_x_ref, b_x_ref, w_h_ref, b_h_ref,
               prof_ref, w_prof_ref, b_prof_ref, w_pe_ref, b_pe_ref,
               w_tg_ref, km_t_ref, vam_ref, w_apr_ref, w_out_ref, b_out_ref,
               out_ref):
        f32 = jnp.float32

        def mm(a, b):
            return jnp.dot(a, b, preferred_element_type=f32)

        def tile_t(x):                                  # (B, F) -> (T*B, F)
            return jnp.concatenate([x] * T, axis=0)

        # ---- hoisted, once-per-call precompute --------------------------------
        xe = mm(x_ref[...], embed_ref[...])             # (T*B, E)  code embedding
        xp = mm(xe, w_x_ref[...]) + b_x_ref[...]        # (T*B, 3H+2V) [r|z|n|erase|add]
        prof_e = mm(prof_ref[...], w_prof_ref[...]) + b_prof_ref[...]    # (B, PE)
        pconst = mm(prof_e, w_pe_ref[...]) + b_pe_ref[...]               # (B, E+PE)
        tran_const = pconst[:, 0:E]                     # profile part of tranH
        ap_const = pconst[:, E:E + PE]                  # profile part of attnOnPro
        mask = mask_ref[...]                            # (T*B, 1) validity
        w_h = w_h_ref[...]                              # (H, 3H)
        b_h = b_h_ref[...]                              # (1, 3H) (only n-bias nonzero)

        # ---- loop 1: GRU recurrence (PyTorch gate order r, z, n) ---------------
        h = jnp.zeros((B, H), f32)
        g_list = []
        for t in range(T):
            xp_t = xp[t * B:(t + 1) * B, :]
            hp = mm(h, w_h) + b_h                       # (B, 3H)  only per-step matmul
            r = jax.nn.sigmoid(xp_t[:, 0:H] + hp[:, 0:H])
            z = jax.nn.sigmoid(xp_t[:, H:2 * H] + hp[:, H:2 * H])
            n = jnp.tanh(xp_t[:, 2 * H:3 * H] + r * hp[:, 2 * H:3 * H])
            h_new = (1.0 - z) * n + z * h
            m_t = mask[t * B:(t + 1) * B, :]            # (B, 1)
            h = m_t * h_new + (1.0 - m_t) * h           # hidden stops at length
            g_list.append(m_t * h_new)                  # pad_packed -> zeros
        G = jnp.concatenate(g_list, axis=0)             # (T*B, H)

        # ---- slot-attention weights for all timesteps at once ------------------
        tran = mm(G, w_tg_ref[...]) + tile_t(tran_const)          # (T*B, E)
        sl = mm(tran, km_t_ref[...])                              # (T*B, slot)
        sl = sl - jnp.max(sl, axis=-1, keepdims=True)
        ew = jnp.exp(sl)
        sw_all = ew * pl.reciprocal(jnp.sum(ew, axis=-1, keepdims=True), approx=True)

        erase_all = jax.nn.sigmoid(xp[:, 3 * H:3 * H + V])        # (T*B, V)
        add_all = jnp.tanh(xp[:, 3 * H + V:3 * H + 2 * V])        # (T*B, V)

        # ---- loop 2: key-value memory read + erase/add update (pure VPU) -------
        vm = [jnp.broadcast_to(vam_ref[s:s + 1, :], (B, V)) for s in range(n_slot)]
        read_list = []
        for t in range(T):
            sw = sw_all[t * B:(t + 1) * B, :]
            er = erase_all[t * B:(t + 1) * B, :]
            ad = add_all[t * B:(t + 1) * B, :]
            read_t = jnp.zeros((B, V), f32)
            for s in range(n_slot):
                read_t = read_t + sw[:, s:s + 1] * vm[s]
            read_list.append(read_t)
            for s in range(n_slot):
                sw_s = sw[:, s:s + 1]
                vm[s] = vm[s] * (1.0 - sw_s * er) + sw_s * ad
        READ = jnp.concatenate(read_list, axis=0)                 # (T*B, V)

        # ---- profile attention + output projection + softmax (batched) ---------
        prof_rep = tile_t(prof_e)                                 # (T*B, PE)
        attn = jax.nn.relu(mm(READ, w_apr_ref[...]) + tile_t(ap_const))
        prof_mod = prof_rep * attn
        final = jnp.concatenate([G, READ, prof_mod], axis=1)      # (T*B, H+V+PE)
        logits = mm(final, w_out_ref[...]) + b_out_ref[...]       # (T*B, D)
        logits = logits - jnp.max(logits, axis=-1, keepdims=True)
        e = jnp.exp(logits)
        out_ref[...] = e / jnp.sum(e, axis=-1, keepdims=True)     # exact softmax

    return kernel


# =============================================================================
# Wrapper (glue: gathers, level padding, weight slab packing, pallas_call setup)
# =============================================================================
def gru_predictor_forward(params, X, X_lengths, profiles,
                          leaves_list, ancestors_list, map_info, km_ids):
    T, B, D = X.shape
    E, H = EMBD_SIZE, HIDDEN_SIZE
    PE, V, SLOT = PROFILE_EMBD_SIZE, VALUE_SIZE, SLOT_NUM
    ini = params["ini_embd"]

    # --- GRAM ontology attention: one fused Pallas call over all leaf groups ---
    l_max = max(int(lv.shape[1]) for lv in leaves_list)
    s_total = sum(int(lv.shape[0]) for lv in leaves_list)
    le_lvls, ae_lvls, m_lvls = [], [], []
    for l in range(l_max):
        le_rows, ae_rows, m_rows = [], [], []
        for leaves, anc in zip(leaves_list, ancestors_list):
            s_g, l_g = leaves.shape
            if l < l_g:
                le_rows.append(ini[leaves[:, l]])
                ae_rows.append(ini[anc[:, l]])
                m_rows.append(jnp.ones((s_g, 1), jnp.float32))
            else:                                        # padded ancestor level
                le_rows.append(jnp.zeros((s_g, E), jnp.float32))
                ae_rows.append(jnp.zeros((s_g, E), jnp.float32))
                m_rows.append(jnp.zeros((s_g, 1), jnp.float32))
        le_lvls.append(jnp.concatenate(le_rows, axis=0))
        ae_lvls.append(jnp.concatenate(ae_rows, axis=0))
        m_lvls.append(jnp.concatenate(m_rows, axis=0))
    le_flat = jnp.concatenate(le_lvls, axis=0)           # (Lmax*S, E) level-major
    ae_flat = jnp.concatenate(ae_lvls, axis=0)
    m_flat = jnp.concatenate(m_lvls, axis=0)             # (Lmax*S, 1)

    wa_w, wa_b = params["Wa_w"], params["Wa_b"]
    wa_l = wa_w[:, :E].T                                 # (E, A)
    wa_a = wa_w[:, E:].T                                 # (E, A)
    ba = wa_b[None, :]                                   # (1, A)
    ua = params["Ua_w"].T                                # (A, 1)

    embeds = pl.pallas_call(
        _make_tree_attn_kernel(l_max, s_total),
        out_shape=jax.ShapeDtypeStruct((s_total, E), jnp.float32),
    )(le_flat, ae_flat, m_flat, wa_l, wa_a, ba, ua)
    embed_mat = embeds[map_info]                         # (dict, E)
    km_t = ini[km_ids].T                                 # (E, slot)

    # --- GRU / erase / add fused into one input-side slab (contraction over E) --
    w_ih, w_hh = params["gru_w_ih"], params["gru_w_hh"]
    b_ih, b_hh = params["gru_b_ih"], params["gru_b_hh"]
    w_x = jnp.concatenate([w_ih.T,                       # (E, 3H)  [r|z|n]
                           params["erase_w"].T,          # (E, V)
                           params["add_w"].T], axis=1)   # (E, 3H+2V)
    b_x = jnp.concatenate([b_ih[:2 * H] + b_hh[:2 * H],  # r,z hidden biases folded
                           b_ih[2 * H:],                 # n input bias
                           params["erase_b"],
                           params["add_b"]])[None, :]    # (1, 3H+2V)
    w_h = w_hh.T                                         # (H, 3H)  [r|z|n]
    b_h = jnp.concatenate([jnp.zeros((2 * H,), jnp.float32),
                           b_hh[2 * H:]])[None, :]       # (1, 3H), only b_hn

    # --- profile-side weights / constants ---------------------------------------
    prof_w = params["prof_w"].T                          # (P, PE)
    prof_b = params["prof_b"][None, :]                   # (1, PE)
    tran_w, tran_b = params["tran_w"], params["tran_b"]
    w_tg = tran_w[:, :H].T                               # (H, E)  gru part of tranH
    w_tp = tran_w[:, H:].T                               # (PE, E) profile part of tranH
    ap_w, ap_b = params["ap_w"], params["ap_b"]
    w_ap_p = ap_w[:, :PE].T                              # (PE, PE)
    w_ap_r = ap_w[:, PE:].T                              # (V, PE)
    w_pe = jnp.concatenate([w_tp, w_ap_p], axis=1)       # (PE, E+PE)  [tranH|attnOnPro]
    b_pe = jnp.concatenate([tran_b, ap_b])[None, :]      # (1, E+PE)
    w_out = params["out_w"].T                            # (H+V+PE, D)
    b_out = params["out_b"][None, :]                     # (1, D)

    # --- sequence-kernel inputs ---------------------------------------------------
    x_flat = X.astype(jnp.float32).reshape(T * B, D)
    mask_flat = (jnp.arange(T)[:, None] < X_lengths[None, :]) \
        .astype(jnp.float32).reshape(T * B, 1)

    out_flat = pl.pallas_call(
        _make_sequence_kernel(T, B, E, H, V, PE, SLOT),
        out_shape=jax.ShapeDtypeStruct((T * B, D), jnp.float32),
    )(x_flat, mask_flat, embed_mat, w_x, b_x, w_h, b_h,
      profiles.astype(jnp.float32), prof_w, prof_b, w_pe, b_pe,
      w_tg, km_t, params["iniVam"], w_ap_r, w_out, b_out)

    return out_flat.reshape(T, B, D)


# =============================================================================
# Pure-JAX reference (mirrors the PyTorch forward) for a correctness check
# =============================================================================
def reference_forward(params, X, X_lengths, profiles,
                      leaves_list, ancestors_list, map_info, km_ids):
    E, H = EMBD_SIZE, HIDDEN_SIZE
    PE, V, S = PROFILE_EMBD_SIZE, VALUE_SIZE, SLOT_NUM
    T, B, D = X.shape
    ini = params["ini_embd"]

    embeds = []
    for leaves, anc in zip(leaves_list, ancestors_list):
        le = ini[leaves]                                        # (S, L, E)
        ae = ini[anc]
        cat = jnp.concatenate([le, ae], axis=2)
        hh = jnp.tanh(cat @ params["Wa_w"].T + params["Wa_b"])
        scores = (hh @ params["Ua_w"].T)[..., 0]
        w = jax.nn.softmax(scores, axis=1)
        embeds.append(jnp.einsum("sl,sle->se", w, ae))
    embed_mat = jnp.concatenate(embeds, axis=0)[map_info]
    km = ini[km_ids]

    Xe = jnp.einsum("tbd,de->tbe", X, embed_mat)

    w_ih, w_hh = params["gru_w_ih"], params["gru_w_hh"]
    b_ih, b_hh = params["gru_b_ih"], params["gru_b_hh"]
    h = jnp.zeros((B, H), jnp.float32)
    gru_out = []
    for t in range(T):
        gi = Xe[t] @ w_ih.T + b_ih
        gh = h @ w_hh.T + b_hh
        r = jax.nn.sigmoid(gi[:, :H] + gh[:, :H])
        z = jax.nn.sigmoid(gi[:, H:2 * H] + gh[:, H:2 * H])
        n = jnp.tanh(gi[:, 2 * H:] + r * gh[:, 2 * H:])
        h_new = (1 - z) * n + z * h
        valid = (t < X_lengths)[:, None]
        h = jnp.where(valid, h_new, h)
        gru_out.append(jnp.where(valid, h_new, 0.0))
    gru_out = jnp.stack(gru_out)

    prof_e = profiles @ params["prof_w"].T + params["prof_b"]
    prof_rep = jnp.broadcast_to(prof_e[None], (T, B, PE))

    tran = jnp.concatenate([gru_out, prof_rep], axis=2) @ params["tran_w"].T + params["tran_b"]
    slot_w = jax.nn.softmax(jnp.einsum("tbe,se->tbs", tran, km), axis=2)

    VM = jnp.broadcast_to(params["iniVam"][None], (B, S, V))
    reads = []
    for t in range(T):
        sw = slot_w[t]
        reads.append(jnp.einsum("bs,bsv->bv", sw, VM))
        erase = jax.nn.sigmoid(Xe[t] @ params["erase_w"].T + params["erase_b"])
        add = jnp.tanh(Xe[t] @ params["add_w"].T + params["add_b"])
        VM = VM * (1 - sw[:, :, None] * erase[:, None, :]) + sw[:, :, None] * add[:, None, :]
    read = jnp.stack(reads)

    attn = jax.nn.relu(jnp.concatenate([prof_rep, read], axis=2) @ params["ap_w"].T
                       + params["ap_b"])
    prof_mod = prof_rep * attn
    final = jnp.concatenate([gru_out, read, prof_mod], axis=2)
    logits = final @ params["out_w"].T + params["out_b"]
    return jax.nn.softmax(logits, axis=2)


# =============================================================================
# Deterministic parameter / input construction + run
# =============================================================================
def init_params(key):
    ks = jax.random.split(key, 21)

    def rnd(i, shape, scale=0.3):
        return scale * jax.random.normal(ks[i], shape, dtype=jnp.float32)

    E, H, A = EMBD_SIZE, HIDDEN_SIZE, ATTEN_SIZE
    V, P, PE, D = VALUE_SIZE, PROFILE_SIZE, PROFILE_EMBD_SIZE, DICT_SIZE
    return {
        "ini_embd": rnd(0, (TOTAL_NODE_SIZE, E), 0.5),
        "Wa_w": rnd(1, (A, 2 * E)), "Wa_b": rnd(2, (A,)),
        "Ua_w": rnd(3, (1, A)),
        "gru_w_ih": rnd(4, (3 * H, E)), "gru_w_hh": rnd(5, (3 * H, H)),
        "gru_b_ih": rnd(6, (3 * H,)), "gru_b_hh": rnd(7, (3 * H,)),
        "tran_w": rnd(8, (E, H + PE)), "tran_b": rnd(9, (E,)),
        "out_w": rnd(10, (D, H + V + PE)), "out_b": rnd(11, (D,)),
        "erase_w": rnd(12, (V, E)), "erase_b": rnd(13, (V,)),
        "add_w": rnd(14, (V, E)), "add_b": rnd(15, (V,)),
        "iniVam": rnd(16, (SLOT_NUM, V), 0.5),
        "prof_w": rnd(17, (PE, P)), "prof_b": rnd(18, (PE,)),
        "ap_w": rnd(19, (PE, PE + V)), "ap_b": rnd(20, (PE,)),
    }


if __name__ == "__main__":
    root = jax.random.PRNGKey(0)
    k_param, k_l1, k_a1, k_l2, k_a2, k_map, k_x, k_prof = jax.random.split(root, 8)
    params = init_params(k_param)

    # GRAM-style ontology index structure: two leaf-groups grouped by #ancestors
    leaves1 = jax.random.randint(k_l1, (10, 3), 0, TOTAL_NODE_SIZE, dtype=jnp.int32)
    anc1 = jax.random.randint(k_a1, (10, 3), 0, TOTAL_NODE_SIZE, dtype=jnp.int32)
    leaves2 = jax.random.randint(k_l2, (6, 2), 0, TOTAL_NODE_SIZE, dtype=jnp.int32)
    anc2 = jax.random.randint(k_a2, (6, 2), 0, TOTAL_NODE_SIZE, dtype=jnp.int32)
    leaves_list = [leaves1, leaves2]
    ancestors_list = [anc1, anc2]
    map_info = jax.random.permutation(k_map, DICT_SIZE).astype(jnp.int32)
    km_ids = jnp.array([1, 5, 9, 13], dtype=jnp.int32)

    # multi-hot code input (seq, batch, dict), descending valid lengths, profiles
    X = jax.random.bernoulli(k_x, 0.3, (SEQ_LEN, BATCH, DICT_SIZE)).astype(jnp.float32)
    X_lengths = jnp.array([6, 5, 3, 2], dtype=jnp.int32)
    profiles = jax.random.normal(k_prof, (BATCH, PROFILE_SIZE), dtype=jnp.float32)

    out = gru_predictor_forward(params, X, X_lengths, profiles,
                                leaves_list, ancestors_list, map_info, km_ids)
    out = jax.block_until_ready(out)

    ref = jax.block_until_ready(
        reference_forward(params, X, X_lengths, profiles,
                          leaves_list, ancestors_list, map_info, km_ids))

    out_np, ref_np = np.asarray(out), np.asarray(ref)
    assert out_np.shape == (SEQ_LEN, BATCH, DICT_SIZE)
    assert np.all(np.isfinite(out_np))
    np.testing.assert_allclose(out_np.sum(-1), np.ones((SEQ_LEN, BATCH)), atol=1e-4)
    np.testing.assert_allclose(out_np, ref_np, atol=3e-3, rtol=3e-3)
    print("KERNEL_OK")
</pallas_src>

<mosaic_0001>
module attributes {stable_mosaic.version = 11 : i64} {
  func.func @kernel(%arg0: memref<48x8xf32, #tpu.memory_space<vmem>>, %arg1: memref<48x8xf32, #tpu.memory_space<vmem>>, %arg2: memref<48x1xf32, #tpu.memory_space<vmem>>, %arg3: memref<8x8xf32, #tpu.memory_space<vmem>>, %arg4: memref<8x8xf32, #tpu.memory_space<vmem>>, %arg5: memref<1x8xf32, #tpu.memory_space<vmem>>, %arg6: memref<8x1xf32, #tpu.memory_space<vmem>>, %arg7: memref<16x8xf32, #tpu.memory_space<vmem>>) attributes {dimension_semantics = [], scalar_prefetch = 0 : i64, scratch_operands = 0 : i64, tpu.core_type = #tpu.core_type<tc>} {
    %c0 = arith.constant 0 : index
    %c0_0 = arith.constant 0 : index
    %0 = vector.load %arg0[%c0, %c0_0] : memref<48x8xf32, #tpu.memory_space<vmem>>, vector<48x8xf32>
    %c0_1 = arith.constant 0 : index
    %c0_2 = arith.constant 0 : index
    %1 = vector.load %arg1[%c0_1, %c0_2] : memref<48x8xf32, #tpu.memory_space<vmem>>, vector<48x8xf32>
    %c0_3 = arith.constant 0 : index
    %c0_4 = arith.constant 0 : index
    %2 = vector.load %arg2[%c0_3, %c0_4] : memref<48x1xf32, #tpu.memory_space<vmem>>, vector<48x1xf32>
    %c0_5 = arith.constant 0 : index
    %c0_6 = arith.constant 0 : index
    %3 = vector.load %arg3[%c0_5, %c0_6] : memref<8x8xf32, #tpu.memory_space<vmem>>, vector<8x8xf32>
    %cst = arith.constant dense<0.000000e+00> : vector<48x8xf32>
    %4 = tpu.matmul %0, %3, %cst {dimension_numbers = #tpu.dot_dimension_numbers<[1], [0], [0], [1], [0, 0, 1, 1], [], []>} : vector<48x8xf32>, vector<8x8xf32>, vector<48x8xf32> -> vector<48x8xf32>
    %c0_7 = arith.constant 0 : index
    %c0_8 = arith.constant 0 : index
    %5 = vector.load %arg4[%c0_7, %c0_8] : memref<8x8xf32, #tpu.memory_space<vmem>>, vector<8x8xf32>
    %cst_9 = arith.constant dense<0.000000e+00> : vector<48x8xf32>
    %6 = tpu.matmul %1, %5, %cst_9 {dimension_numbers = #tpu.dot_dimension_numbers<[1], [0], [0], [1], [0, 0, 1, 1], [], []>} : vector<48x8xf32>, vector<8x8xf32>, vector<48x8xf32> -> vector<48x8xf32>
    %7 = arith.addf %4, %6 : vector<48x8xf32>
    %c0_10 = arith.constant 0 : index
    %c0_11 = arith.constant 0 : index
    %8 = vector.load %arg5[%c0_10, %c0_11] : memref<1x8xf32, #tpu.memory_space<vmem>>, vector<1x8xf32>
    %9 = vector.broadcast %8 : vector<1x8xf32> to vector<48x8xf32>
    %10 = arith.addf %7, %9 : vector<48x8xf32>
    %11 = math.tanh %10 : vector<48x8xf32>
    %c0_12 = arith.constant 0 : index
    %c0_13 = arith.constant 0 : index
    %12 = vector.load %arg6[%c0_12, %c0_13] : memref<8x1xf32, #tpu.memory_space<vmem>>, vector<8x1xf32>
    %cst_14 = arith.constant dense<0.000000e+00> : vector<48x1xf32>
    %13 = tpu.matmul %11, %12, %cst_14 {dimension_numbers = #tpu.dot_dimension_numbers<[1], [0], [0], [1], [0, 0, 1, 1], [], []>} : vector<48x8xf32>, vector<8x1xf32>, vector<48x1xf32> -> vector<48x1xf32>
    %14 = vector.extract_strided_slice %13 {offsets = [0, 0], sizes = [16, 1], strides = [1, 1]} : vector<48x1xf32> to vector<16x1xf32>
    %15 = vector.extract_strided_slice %13 {offsets = [16, 0], sizes = [16, 1], strides = [1, 1]} : vector<48x1xf32> to vector<16x1xf32>
    %16 = arith.maximumf %14, %15 : vector<16x1xf32>
    %17 = vector.extract_strided_slice %13 {offsets = [32, 0], sizes = [16, 1], strides = [1, 1]} : vector<48x1xf32> to vector<16x1xf32>
    %18 = arith.maximumf %16, %17 : vector<16x1xf32>
    %cst_15 = arith.constant 0.000000e+00 : f32
    %19 = vector.broadcast %cst_15 : f32 to vector<16x1xf32>
    %cst_16 = arith.constant 0.000000e+00 : f32
    %20 = vector.broadcast %cst_16 : f32 to vector<16x8xf32>
    %21 = vector.extract_strided_slice %13 {offsets = [0, 0], sizes = [16, 1], strides = [1, 1]} : vector<48x1xf32> to vector<16x1xf32>
    %22 = arith.subf %21, %18 : vector<16x1xf32>
    %23 = math.exp %22 : vector<16x1xf32>
    %24 = vector.extract_strided_slice %2 {offsets = [0, 0], sizes = [16, 1], strides = [1, 1]} : vector<48x1xf32> to vector<16x1xf32>
    %25 = arith.mulf %23, %24 : vector<16x1xf32>
    %26 = arith.addf %19, %25 : vector<16x1xf32>
    %27 = vector.extract_strided_slice %1 {offsets = [0, 0], sizes = [16, 8], strides = [1, 1]} : vector<48x8xf32> to vector<16x8xf32>
    %28 = vector.broadcast %25 : vector<16x1xf32> to vector<16x8xf32>
    %29 = arith.mulf %28, %27 : vector<16x8xf32>
    %30 = arith.addf %20, %29 : vector<16x8xf32>
    %31 = vector.extract_strided_slice %13 {offsets = [16, 0], sizes = [16, 1], strides = [1, 1]} : vector<48x1xf32> to vector<16x1xf32>
    %32 = arith.subf %31, %18 : vector<16x1xf32>
    %33 = math.exp %32 : vector<16x1xf32>
    %34 = vector.extract_strided_slice %2 {offsets = [16, 0], sizes = [16, 1], strides = [1, 1]} : vector<48x1xf32> to vector<16x1xf32>
    %35 = arith.mulf %33, %34 : vector<16x1xf32>
    %36 = arith.addf %26, %35 : vector<16x1xf32>
    %37 = vector.extract_strided_slice %1 {offsets = [16, 0], sizes = [16, 8], strides = [1, 1]} : vector<48x8xf32> to vector<16x8xf32>
    %38 = vector.broadcast %35 : vector<16x1xf32> to vector<16x8xf32>
    %39 = arith.mulf %38, %37 : vector<16x8xf32>
    %40 = arith.addf %30, %39 : vector<16x8xf32>
    %41 = vector.extract_strided_slice %13 {offsets = [32, 0], sizes = [16, 1], strides = [1, 1]} : vector<48x1xf32> to vector<16x1xf32>
    %42 = arith.subf %41, %18 : vector<16x1xf32>
    %43 = math.exp %42 : vector<16x1xf32>
    %44 = vector.extract_strided_slice %2 {offsets = [32, 0], sizes = [16, 1], strides = [1, 1]} : vector<48x1xf32> to vector<16x1xf32>
    %45 = arith.mulf %43, %44 : vector<16x1xf32>
    %46 = arith.addf %36, %45 : vector<16x1xf32>
    %47 = vector.extract_strided_slice %1 {offsets = [32, 0], sizes = [16, 8], strides = [1, 1]} : vector<48x8xf32> to vector<16x8xf32>
    %48 = vector.broadcast %45 : vector<16x1xf32> to vector<16x8xf32>
    %49 = arith.mulf %48, %47 : vector<16x8xf32>
    %50 = arith.addf %40, %49 : vector<16x8xf32>
    %51 = vector.broadcast %46 : vector<16x1xf32> to vector<16x8xf32>
    %52 = arith.divf %50, %51 : vector<16x8xf32>
    %c0_17 = arith.constant 0 : index
    %c0_18 = arith.constant 0 : index
    %53 = vector.load %arg7[%c0_17, %c0_18] : memref<16x8xf32, #tpu.memory_space<vmem>>, vector<16x8xf32>
    tpu.vector_store %arg7[%c0_17, %c0_18], %52 {strides = array<i32>} : memref<16x8xf32, #tpu.memory_space<vmem>>, vector<16x8xf32>,
    return
  }
}

</mosaic_0001>

<bundles_post_ra>
// kernel: tpu_custom_call.1
= control target key start
LH: loop header
LB: loop body
LE: loop exit
PB: predicated region body
PF: predicated region fallthrough
CT: control target
= control target key end

     0   :  { %vm46_vm0 = vcmask 64512   ;;  %v399_v48 = vmov 0   ;;  %s562_s4 = inlined_call_operand.vmem [shape: f32[8,8], index: 4, kind: input, shape index: {}]   ;;  %s563_s1 = inlined_call_operand.vmem [shape: f32[48,8], index: 1, kind: input, shape index: {}]   ;;  %s564_s3 = inlined_call_operand.vmem [shape: f32[8,8], index: 3, kind: input, shape index: {}]   ;;  %s565_s0 = inlined_call_operand.vmem [shape: f32[48,8], index: 0, kind: input, shape index: {}]   ;;  %s566_s5 = inlined_call_operand.vmem [shape: f32[1,8], index: 5, kind: input, shape index: {}]   ;;  %s567_s6 = inlined_call_operand.vmem [shape: f32[8,1], index: 6, kind: input, shape index: {}]   ;;  %s568_s2 = inlined_call_operand.vmem [shape: f32[48,1], index: 2, kind: input, shape index: {}]   ;;  %s569_s7 = inlined_call_operand.vmem [shape: f32[16,8], index: 7, kind: output, shape index: {}]  }
   0x1   :  { %v45_v0 = vld [vmem:[%s562_s4] sm:$0xff]  ;;  %v446_v1 = vld [vmem:[%s563_s1 + $0x8] sm:$0xff]  ;;  %v467_v5 = vld [vmem:[%s563_s1 + $0x10] sm:$0xff]  ;;  %369 = vset.pattern.permute.xlu2 %v399_v48  ;;  %368 = vset.pattern.permute.xlu1 %v399_v48 }
   0x2   :  { %v44_v2 = vld [vmem:[%s564_s3] sm:$0xff]  ;;  %363 = vmatpush.msra.mxu3 %v45_v0  ;;  %v27_v3 = vld [vmem:[%s565_s0 + $0x8] sm:$0xff]  ;;  %80 = vmatpush.msra.mxu0 %v45_v0  ;;  %v28_v6 = vld [vmem:[%s565_s0 + $0x10] sm:$0xff] }
   0x3   :  { %364 = vmatpush.msra.mxu1 %v44_v2  ;;  %v457_v4 = vld [vmem:[%s563_s1] sm:$0xff]  ;;  %346 = vmatmul.msk.f32.vlgmr.msra.gmra.mxu3 %vm46_vm0, %v446_v1  ;;  %v482_v8 = vld [vmem:[%s563_s1 + $0x18] sm:$0xff]  ;;  %v504_v12 = vld [vmem:[%s563_s1 + $0x28] sm:$0xff] }
   0x4   :  { %352 = vmatmul.msk.f32.vlgmr.msra.gmra.mxu1 %vm46_vm0, %v27_v3  ;;  %345 = vmatmul.msk.f32.vlgmr.msra.gmra.mxu0 %vm46_vm0, %v457_v4  ;;  %v26_v7 = vld [vmem:[%s565_s0] sm:$0xff]  ;;  %v29_v9 = vld [vmem:[%s565_s0 + $0x18] sm:$0xff]  ;;  %v31_v13 = vld [vmem:[%s565_s0 + $0x28] sm:$0xff] }
   0x5   :  { %133 = vmatpush.msrb.mxu0 %v44_v2  ;;  %v493_v10 = vld [vmem:[%s563_s1 + $0x20] sm:$0xff]  ;;  %367 = vset.pattern.permute.xlu0 %v399_v48 }
   0x6   :  { %v30_v11 = vld [vmem:[%s565_s0 + $0x20] sm:$0xff] }
   0x7   :  { %v169_v14 = vld [vmem:[%s567_s6] sm:$0xff] }
   0x8   :  { %365 = vmatpush.msra.mxu2 %v169_v14  ;;  %203 = vmatpush.msra.mxu0 %v169_v14  ;;  %v370_v17 = vld [vmem:[%s566_s5] ss:$0 sm:$0xff] }
   0x9   :  { %v38_v3 = vld [vmem:[%s568_s2] sm:$0xff] }
   0xb   :  { %347 = vmatmul.msk.f32.gmra.mxu3 %vm46_vm0, %v467_v5 }
   0xc   :  { %353 = vmatmul.msk.f32.gmra.mxu1 %vm46_vm0, %v28_v6  ;;  %351 = vmatmul.msk.f32.vlgmr.msrb.gmra.mxu0 %vm46_vm0, %v26_v7  ;;  %v40_v6 = vld [vmem:[%s568_s2 + $0x10] sm:$0xff] }
  0x13   :  { %348 = vmatmul.msk.f32.gmra.mxu3 %vm46_vm0, %v482_v8 }
  0x14   :  { %354 = vmatmul.msk.f32.gmra.mxu1 %vm46_vm0, %v29_v9 }
  0x1b   :  { %349 = vmatmul.msk.f32.gmra.mxu3 %vm46_vm0, %v493_v10 }
  0x1c   :  { %355 = vmatmul.msk.f32.gmra.mxu1 %vm46_vm0, %v30_v11 }
  0x23   :  { %350 = vmatmul.msk.f32.gmra.mxu3 %vm46_vm0, %v504_v12 }
  0x24   :  { %356 = vmatmul.msk.f32.gmra.mxu1 %vm46_vm0, %v31_v13 }
  0x81   :  { %v138_v15 = vpop.f32.mrf.mxu1  ;;  %v82_v16 = vpop.f32.mrf.mxu0 }
  0x86   :  { %v85_v18 = vpop.f32.mrf.mxu3 }
  0x87   :  { %v139_v19 = vadd.f32 %v138_v15, %v85_v18 }
  0x89   :  { %v141_v20 = vpop.f32.mrf.mxu1  ;;  %v158_v21 = vadd.f32 %v370_v17, %v139_v19  ;;  %v135_v22 = vpop.f32.mrf.mxu0 }
  0x8a   :  { %v136_v23 = vadd.f32 %v135_v22, %v82_v16  ;;  %v42_v16 = vld [vmem:[%s568_s2 + $0x20] sm:$0xff]  ;;  %v39_v22 = vld [vmem:[%s568_s2 + $0x8] sm:$0xff] }
  0x8b   :  { %371 = vtanh.f32 %v158_v21 }
  0x8c   :  { %v157_v24 = vadd.f32 %v370_v17, %v136_v23  ;;  %v41_v23 = vld [vmem:[%s568_s2 + $0x18] sm:$0xff] }
  0x8e   :  { %v88_v25 = vpop.f32.mrf.mxu3  ;;  %373 = vtanh.f32 %v157_v24 }
  0x8f   :  { %v142_v26 = vadd.f32 %v141_v20, %v88_v25 }
  0x91   :  { %v144_v27 = vpop.f32.mrf.mxu1  ;;  %v372_v28 = vpop.eup %371  ;;  %v159_v29 = vadd.f32 %v370_v17, %v142_v26 }
  0x92   :  { %358 = vmatmul.msk.f32.vlgmr.msra.gmra.mxu2 %vm46_vm0, %v372_v28 }
  0x93   :  { %375 = vtanh.f32 %v159_v29 }
  0x94   :  { %v374_v30 = vpop.eup %373 }
  0x95   :  { %357 = vmatmul.msk.f32.vlgmr.msra.gmra.mxu0 %vm46_vm0, %v374_v30 }
  0x96   :  { %v91_v31 = vpop.f32.mrf.mxu3 }
  0x97   :  { %v145_v32 = vadd.f32 %v144_v27, %v91_v31  ;;  %v43_v27 = vld [vmem:[%s568_s2 + $0x28] sm:$0xff] }
  0x99   :  { %v376_v33 = vpop.eup %375  ;;  %v160_v34 = vadd.f32 %v370_v17, %v145_v32  ;;  %v147_v35 = vpop.f32.mrf.mxu1 }
  0x9a   :  { %359 = vmatmul.msk.f32.gmra.mxu2 %vm46_vm0, %v376_v33 }
  0x9b   :  { %377 = vtanh.f32 %v160_v34 }
  0x9e   :  { %v94_v36 = vpop.f32.mrf.mxu3 }
  0x9f   :  { %v148_v37 = vadd.f32 %v147_v35, %v94_v36 }
  0xa1   :  { %v378_v38 = vpop.eup %377  ;;  %v161_v39 = vadd.f32 %v370_v17, %v148_v37  ;;  %v150_v40 = vpop.f32.mrf.mxu1 }
  0xa2   :  { %360 = vmatmul.msk.f32.gmra.mxu2 %vm46_vm0, %v378_v38 }
  0xa3   :  { %379 = vtanh.f32 %v161_v39 }
  0xa6   :  { %v97_v41 = vpop.f32.mrf.mxu3 }
  0xa7   :  { %v151_v42 = vadd.f32 %v150_v40, %v97_v41 }
  0xa9   :  { %v380_v43 = vpop.eup %379  ;;  %v162_v44 = vadd.f32 %v370_v17, %v151_v42 }
  0xaa   :  { %361 = vmatmul.msk.f32.gmra.mxu2 %vm46_vm0, %v380_v43 }
  0xab   :  { %381 = vtanh.f32 %v162_v44 }
  0xb1   :  { %v382_v45 = vpop.eup %381 }
  0xb2   :  { %362 = vmatmul.msk.f32.gmra.mxu2 %vm46_vm0, %v382_v45 }
 0x112   :  { %v205_v50 = vpop.f32.mrf.mxu0 }
 0x115   :  { %v208_v46 = vpop.f32.mrf.mxu2 }
 0x11d   :  { %v211_v47 = vpop.f32.mrf.mxu2 }
 0x11e   :  { %v223_v51 = vmax.f32 %v205_v50, %v211_v47 }
 0x125   :  { %v214_v49 = vpop.f32.mrf.mxu2 }
 0x126   :  { %v224_v60 = vmax.f32 %v208_v46, %v214_v49 }
 0x12d   :  { %v217_v52 = vpop.f32.mrf.mxu2 }
 0x12e   :  { %v225_v53 = vmax.f32 %v223_v51, %v217_v52 }
 0x130   :  { %v227_v54 = vsub.f32 %v205_v50, %v225_v53  ;;  %v251_v55 = vsub.f32 %v211_v47, %v225_v53  ;;  %v275_v56 = vsub.f32 %v217_v52, %v225_v53 }
 0x132   :  { %v229_v57 = vmul.f32 1.442695, %v227_v54  ;;  %v253_v58 = vmul.f32 1.442695, %v251_v55  ;;  %v277_v59 = vmul.f32 1.442695, %v275_v56 }
 0x134   :  { %383 = vpow2.f32 %v229_v57 }
 0x135   :  { %385 = vpow2.f32 %v253_v58  ;;  %v220_v61 = vpop.f32.mrf.mxu2 }
 0x136   :  { %387 = vpow2.f32 %v277_v59  ;;  %v226_v62 = vmax.f32 %v224_v60, %v220_v61 }
 0x138   :  { %v228_v63 = vsub.f32 %v208_v46, %v226_v62  ;;  %v252_v0 = vsub.f32 %v214_v49, %v226_v62  ;;  %v276_v2 = vsub.f32 %v220_v61, %v226_v62 }
 0x13a   :  { %v384_v7 = vpop.eup %383  ;;  %v231_v9 = vmul.f32 1.442695, %v228_v63  ;;  %v255_v11 = vmul.f32 1.442695, %v252_v0  ;;  %v279_v13 = vmul.f32 1.442695, %v276_v2 }
 0x13b   :  { %v386_v14 = vpop.eup %385  ;;  %v233_v15 = vmul.f32 %v384_v7, %v38_v3 }
 0x13c   :  { %v388_v17 = vpop.eup %387  ;;  %389 = vpow2.f32 %v231_v9  ;;  %v257_v18 = vmul.f32 %v386_v14, %v40_v6 }
 0x13d   :  { %391 = vpow2.f32 %v255_v11  ;;  %239 = vperm.xlu1 %368, %v233_v15   ;;  %v281_v20 = vmul.f32 %v388_v17, %v42_v16 }
 0x13e   :  { %393 = vpow2.f32 %v279_v13  ;;  %263 = vperm.xlu2 %369, %v257_v18   ;;  %v259_v19 = vadd.f32 %v257_v18, %v233_v15 }
 0x140   :  { %v283_v21 = vadd.f32 %v281_v20, %v259_v19 }
 0x142   :  { %v390_v24 = vpop.eup %389  ;;  %301 = vperm.xlu0 %367, %v283_v21  }
 0x143   :  { %v392_v25 = vpop.eup %391  ;;  %v234_v26 = vmul.f32 %v390_v24, %v39_v22 }
 0x144   :  { %v394_v28 = vpop.eup %393  ;;  %v258_v29 = vmul.f32 %v392_v25, %v41_v23 }
 0x145   :  { %244 = vperm.xlu1 %368, %v234_v26   ;;  %v282_v31 = vmul.f32 %v394_v28, %v43_v27 }
 0x146   :  { %268 = vperm.xlu2 %369, %v258_v29   ;;  %v260_v30 = vadd.f32 %v258_v29, %v234_v26 }
 0x148   :  { %v284_v32 = vadd.f32 %v282_v31, %v260_v30 }
 0x14a   :  { %306 = vperm.xlu0 %367, %v284_v32  }
 0x14d   :  { %292 = vperm.xlu1 %368, %v282_v31  }
 0x152   :  { %287 = vperm.xlu0 %367, %v281_v20  }
 0x198   :  { %v264_v35 = vpop.permute.xlu2 %263 }
 0x199   :  { %v271_v46 = vmul.f32 %v264_v35, %v467_v5 }
 0x1a0   :  { %v269_v47 = vpop.permute.xlu2 %268 }
 0x1a1   :  { %v272_v55 = vmul.f32 %v269_v47, %v482_v8 }
 0x1af   :  { %v240_v33 = vpop.permute.xlu1 %239 }
 0x1b0   :  { %v247_v42 = vmul.f32 %v240_v33, %v457_v4 }
 0x1b2   :  { %v273_v52 = vadd.f32 %v271_v46, %v247_v42 }
 0x1b4   :  { %v302_v34 = vpop.permute.xlu0 %301 }
 0x1b5   :  { %395 = vrcp.f32 %v302_v34  ;;  %v320_v43 = vand.u32 2147483648, %v302_v34  ;;  %vm314_vm2 = vweird.f32 %v302_v34  ;;  %v318_v48 = vand.u32 2147483647, %v302_v34 }
 0x1b7   :  { %v245_v37 = vpop.permute.xlu1 %244  ;;  %v321_v56 = vor.u32 1.1754944e-38, %v320_v43  ;;  %vm319_vm4 = vcmp.eq.f32.partialorder %v318_v48, 8.507059e+37 }
 0x1b8   :  { %v248_v5 = vmul.f32 %v245_v37, %v446_v1 }
 0x1ba   :  { %v274_v2 = vadd.f32 %v272_v55, %v248_v5 }
 0x1bb   :  { %v396_v36 = vpop.eup %395 }
 0x1bc   :  { %v310_v38 = vmul.f32 %v396_v36, %v302_v34  ;;  %v307_v39 = vpop.permute.xlu0 %306  ;;  %vm315_vm1 = vweird.f32 %v396_v36 }
 0x1bd   :  { %397 = vrcp.f32 %v307_v39  ;;  %vm544_vm3 = vmor %vm314_vm2, %vm315_vm1  ;;  %v335_v58 = vand.u32 2147483648, %v307_v39  ;;  %v333_v59 = vand.u32 2147483647, %v307_v39  ;;  %vm329_vm6 = vweird.f32 %v307_v39 }
 0x1be   :  { %v311_v40 = vsub.f32 1.0, %v310_v38 }
 0x1bf   :  { %v293_v53 = vpop.permute.xlu1 %292  ;;  %vm334_vm8 = vcmp.eq.f32.partialorder %v333_v59, 8.507059e+37 }
 0x1c0   :  { %v312_v41 = vmul.f32 %v396_v36, %v311_v40  ;;  %v296_v62 = vmul.f32 %v293_v53, %v504_v12 }
 0x1c2   :  { %v313_v44 = vadd.f32 %v396_v36, %v312_v41  ;;  %v298_v1 = vadd.f32 %v296_v62, %v274_v2 }
 0x1c3   :  { %v398_v45 = vpop.eup %397 }
 0x1c4   :  { %v325_v50 = vmul.f32 %v398_v45, %v307_v39  ;;  %v288_v51 = vpop.permute.xlu0 %287  ;;  %v317_v4 = vsel %vm544_vm3, %v396_v36, %v313_v44  ;;  %vm330_vm5 = vweird.f32 %v398_v45 }
 0x1c5   :  { %v295_v54 = vmul.f32 %v288_v51, %v493_v10  ;;  %v322_v63 = vsel %vm319_vm4, %v321_v56, %v317_v4  ;;  %vm331_vm7 = vmor %vm329_vm6, %vm330_vm5  ;;  %v336_v10 = vor.u32 1.1754944e-38, %v335_v58 }
 0x1c6   :  { %v326_v57 = vsub.f32 1.0, %v325_v50 }
 0x1c7   :  { %v297_v60 = vadd.f32 %v295_v54, %v273_v52 }
 0x1c8   :  { %v327_v61 = vmul.f32 %v398_v45, %v326_v57 }
 0x1c9   :  { %v323_v0 = vmul.f32 %v322_v63, %v297_v60 }
 0x1ca   :  { %v328_v3 = vadd.f32 %v398_v45, %v327_v61 }
 0x1cb   :  { %339 = vst.msk [vmem:[%s569_s7] sm:$0xff] %vm46_vm0, %v323_v0 }
 0x1cc   :  { %v332_v8 = vsel %vm331_vm7, %v398_v45, %v328_v3 }
 0x1cd   :  { %v337_v6 = vsel %vm334_vm8, %v336_v10, %v332_v8 }
 0x1ce   :  { %v338_v7 = vmul.f32 %v337_v6, %v298_v1 }
 0x1d0   :  { %340 = vst.msk [vmem:[%s569_s7 + $0x8] sm:$0xff] %vm46_vm0, %v338_v7 }

</bundles_post_ra>
